<compile_context>
chip_gen: v6e
topology: v6e:2x2x1
jax: 0.10.0
libtpu: 0.0.40
codegen_flags: <defaults>
</compile_context>

<pallas_src>
import jax
import jax.numpy as jnp
from jax.experimental import pallas as pl
from jax.experimental.pallas import tpu as pltpu


def _cdiv(a, b):
    return -(-a // b)


def _round_up(x, m):
    return (x + m - 1) // m * m


def deep_survival_kernel(x_ref, w1_ref, b1_ref, w2_ref, b2_ref, w3_ref, b3_ref, o_ref):
    """One batch tile of the DeepSurvival MLP.

    x_ref  : [TILE_N, F]   sample-major tile straight from HBM (no host transpose)
    w1_ref : [H1, F]       bf16, PyTorch [out, in] layout -> no transpose needed
    b1_ref : [H1, 1]       f32
    w2_ref : [H2, H1]      bf16
    b2_ref : [H2, 1]       f32
    w3_ref : [H2, 1]       f32, final matvec weight as a column
    b3_ref : [1, 1]        f32 scalar bias in SMEM
    o_ref  : [1, TILE_N]   lane-dense output block
    """
    # In-kernel transpose to feature-major (F on sublanes, batch on lanes), then cast
    # to bf16 so the two MXU matmuls run single-pass.
    x_fm = x_ref[...].T.astype(jnp.bfloat16)                              # [F, TILE_N]

    # Layers 1 & 2 on the MXU, f32 accumulation, bias broadcast along lanes, ReLU on VPU.
    h1 = jnp.dot(w1_ref[...], x_fm, preferred_element_type=jnp.float32)  # [H1, TILE_N]
    h1 = jnp.maximum(h1 + b1_ref[...], 0.0)
    h2 = jnp.dot(w2_ref[...], h1.astype(jnp.bfloat16),                   # [H2, TILE_N]
                 preferred_element_type=jnp.float32)
    h2 = jnp.maximum(h2 + b2_ref[...], 0.0)

    # Final layer has output width 1: MXU would be <1% utilized, so VPU multiply +
    # XLU sublane-reduce. Result stays lane-dense: [1, TILE_N].
    risk = jnp.sum(h2 * w3_ref[...], axis=0, keepdims=True)
    o_ref[...] = (risk + b3_ref[0, 0]).astype(o_ref.dtype)


def deep_survival_forward(x, w1, b1, w2, b2, w3, b3, *, max_tile_n=16384):
    """x: [N, F]; weights in PyTorch layout: w1 [H1,F], w2 [H2,H1], w3 [1,H2]."""
    n, f = x.shape
    h1_dim = w1.shape[0]
    h2_dim = w2.shape[0]
    assert w1.shape == (h1_dim, f)
    assert w2.shape == (h2_dim, h1_dim)
    assert w3.shape == (1, h2_dim)

    # Batch tile on the lanes: multiple of 128, large enough to amortize per-step
    # overhead, but capped so the grid has >= ~8 steps (v7x: 2 TCs share the grid).
    tile_n = min(max_tile_n, max(128, _round_up(_cdiv(n, 8), 128)))
    num_tiles = _cdiv(n, tile_n)
    n_out = num_tiles * tile_n  # only the tiny (1, N) output is padded; x is not.

    # no-op casts when already the right dtype; weights go bf16 for the MXU.
    x_f32 = x.astype(jnp.float32)
    w1_bf = w1.astype(jnp.bfloat16)
    w2_bf = w2.astype(jnp.bfloat16)
    b1_c = b1.reshape(h1_dim, 1).astype(jnp.float32)
    b2_c = b2.reshape(h2_dim, 1).astype(jnp.float32)
    w3_c = w3.reshape(h2_dim, 1).astype(jnp.float32)
    b3_s = b3.reshape(1, 1).astype(jnp.float32)

    out = pl.pallas_call(
        deep_survival_kernel,
        out_shape=jax.ShapeDtypeStruct((1, n_out), jnp.float32),
        grid=(num_tiles,),
        in_specs=[
            pl.BlockSpec((tile_n, f), lambda i: (i, 0)),          # x tile (streamed)
            pl.BlockSpec((h1_dim, f), lambda i: (0, 0)),          # W1 (resident, bf16)
            pl.BlockSpec((h1_dim, 1), lambda i: (0, 0)),          # b1 (resident)
            pl.BlockSpec((h2_dim, h1_dim), lambda i: (0, 0)),     # W2 (resident, bf16)
            pl.BlockSpec((h2_dim, 1), lambda i: (0, 0)),          # b2 (resident)
            pl.BlockSpec((h2_dim, 1), lambda i: (0, 0)),          # W3 column (resident)
            pl.BlockSpec(memory_space=pltpu.MemorySpace.SMEM),    # b3 scalar
        ],
        out_specs=pl.BlockSpec((1, tile_n), lambda i: (0, i)),    # lane-dense output
        compiler_params=pltpu.CompilerParams(
            dimension_semantics=("parallel",),      # shard batch tiles across TCs
            vmem_limit_bytes=32 * 1024 * 1024,      # safe on v7x; could raise on v5e/v6e
        ),
    )(x_f32, w1_bf, b1_c, w2_bf, b2_c, w3_c, b3_s)

    return out[0, :n].reshape(n, 1)


if __name__ == "__main__":
    num_features = 32      # input_dim (data-dependent via vectorize_x in the torch code)
    hidden_dim = 64        # module default; second hidden is hidden_dim // 2
    batch = 8

    key = jax.random.PRNGKey(0)
    kx, k1, k2, k3, kb1, kb2, kb3 = jax.random.split(key, 7)

    def kaiming_uniform(k, shape):
        # mirrors nn.init.kaiming_uniform_(..., nonlinearity='relu'): U(-sqrt(6/fan_in), +)
        bound = jnp.sqrt(6.0 / jnp.float32(shape[1]))
        return jax.random.uniform(k, shape, jnp.float32, -bound, bound)

    def bias_uniform(k, fan_in, size):
        bound = 1.0 / jnp.sqrt(jnp.float32(fan_in))
        return jax.random.uniform(k, (size,), jnp.float32, -bound, bound)

    w1 = kaiming_uniform(k1, (hidden_dim, num_features))
    w2 = kaiming_uniform(k2, (hidden_dim // 2, hidden_dim))
    w3 = kaiming_uniform(k3, (1, hidden_dim // 2))
    b1 = bias_uniform(kb1, num_features, hidden_dim)
    b2 = bias_uniform(kb2, hidden_dim, hidden_dim // 2)
    b3 = bias_uniform(kb3, hidden_dim // 2, 1)

    x = jax.random.normal(kx, (batch, num_features), jnp.float32)

    out = deep_survival_forward(x, w1, b1, w2, b2, w3, b3)
    out = jax.block_until_ready(out)

    # Plain-JAX f32 reference with the same semantics as the torch nn.Sequential.
    h = jnp.maximum(x @ w1.T + b1, 0.0)
    h = jnp.maximum(h @ w2.T + b2, 0.0)
    ref = h @ w3.T + b3

    assert out.shape == (batch, 1)
    # bf16 MXU inputs (f32 accumulation) vs f32 reference -> slightly looser tolerance.
    assert jnp.allclose(out, ref, atol=5e-2, rtol=5e-2), float(jnp.max(jnp.abs(out - ref)))

    print("KERNEL_OK")
</pallas_src>

<mosaic_0001>
module attributes {stable_mosaic.version = 11 : i64} {
  func.func @deep_survival_kernel(%arg0: i32, %arg1: memref<128x32xf32, #tpu.memory_space<vmem>>, %arg2: memref<64x32xbf16, #tpu.memory_space<vmem>>, %arg3: memref<64x1xf32, #tpu.memory_space<vmem>>, %arg4: memref<32x64xbf16, #tpu.memory_space<vmem>>, %arg5: memref<32x1xf32, #tpu.memory_space<vmem>>, %arg6: memref<32x1xf32, #tpu.memory_space<vmem>>, %arg7: memref<1x1xf32, #tpu.memory_space<smem>>, %arg8: memref<1x128xf32, #tpu.memory_space<vmem>>) attributes {dimension_semantics = [#tpu.dimension_semantics<parallel>], iteration_bounds = array<i64: 1>, scalar_prefetch = 0 : i64, scratch_operands = 0 : i64, tpu.core_type = #tpu.core_type<tc>, window_params = [{transform_indices = @transform_0, window_bounds = array<i64: 128, 32>}, {pipeline_mode = #tpu.pipeline_mode<synchronous>, transform_indices = @transform_1, window_bounds = array<i64: 64, 32>}, {pipeline_mode = #tpu.pipeline_mode<synchronous>, transform_indices = @transform_2, window_bounds = array<i64: 64, 1>}, {pipeline_mode = #tpu.pipeline_mode<synchronous>, transform_indices = @transform_3, window_bounds = array<i64: 32, 64>}, {pipeline_mode = #tpu.pipeline_mode<synchronous>, transform_indices = @transform_4, window_bounds = array<i64: 32, 1>}, {pipeline_mode = #tpu.pipeline_mode<synchronous>, transform_indices = @transform_5, window_bounds = array<i64: 32, 1>}, {transform_indices = @transform_6, window_bounds = array<i64: 1, 1>}, {transform_indices = @transform_7, window_bounds = array<i64: 1, 128>}]} {
    %c0 = arith.constant 0 : index
    %c0_0 = arith.constant 0 : index
    %0 = vector.load %arg1[%c0, %c0_0] : memref<128x32xf32, #tpu.memory_space<vmem>>, vector<128x32xf32>
    %1 = tpu.transpose %0, [1, 0] : vector<128x32xf32> -> vector<32x128xf32>
    %2 = arith.truncf %1 : vector<32x128xf32> to vector<32x128xbf16>
    %c0_1 = arith.constant 0 : index
    %c0_2 = arith.constant 0 : index
    %3 = vector.load %arg2[%c0_1, %c0_2] : memref<64x32xbf16, #tpu.memory_space<vmem>>, vector<64x32xbf16>
    %cst = arith.constant dense<0.000000e+00> : vector<64x128xf32>
    %4 = tpu.matmul %3, %2, %cst {dimension_numbers = #tpu.dot_dimension_numbers<[1], [0], [0], [1], [0, 0, 1, 1], [], []>} : vector<64x32xbf16>, vector<32x128xbf16>, vector<64x128xf32> -> vector<64x128xf32>
    %c0_3 = arith.constant 0 : index
    %c0_4 = arith.constant 0 : index
    %5 = vector.load %arg3[%c0_3, %c0_4] : memref<64x1xf32, #tpu.memory_space<vmem>>, vector<64x1xf32>
    %6 = vector.broadcast %5 : vector<64x1xf32> to vector<64x128xf32>
    %7 = arith.addf %4, %6 : vector<64x128xf32>
    %cst_5 = arith.constant 0.000000e+00 : f32
    %8 = vector.broadcast %cst_5 : f32 to vector<64x128xf32>
    %9 = arith.maximumf %7, %8 : vector<64x128xf32>
    %c0_6 = arith.constant 0 : index
    %c0_7 = arith.constant 0 : index
    %10 = vector.load %arg4[%c0_6, %c0_7] : memref<32x64xbf16, #tpu.memory_space<vmem>>, vector<32x64xbf16>
    %11 = arith.truncf %9 : vector<64x128xf32> to vector<64x128xbf16>
    %cst_8 = arith.constant dense<0.000000e+00> : vector<32x128xf32>
    %12 = tpu.matmul %10, %11, %cst_8 {dimension_numbers = #tpu.dot_dimension_numbers<[1], [0], [0], [1], [0, 0, 1, 1], [], []>} : vector<32x64xbf16>, vector<64x128xbf16>, vector<32x128xf32> -> vector<32x128xf32>
    %c0_9 = arith.constant 0 : index
    %c0_10 = arith.constant 0 : index
    %13 = vector.load %arg5[%c0_9, %c0_10] : memref<32x1xf32, #tpu.memory_space<vmem>>, vector<32x1xf32>
    %14 = vector.broadcast %13 : vector<32x1xf32> to vector<32x128xf32>
    %15 = arith.addf %12, %14 : vector<32x128xf32>
    %cst_11 = arith.constant 0.000000e+00 : f32
    %16 = vector.broadcast %cst_11 : f32 to vector<32x128xf32>
    %17 = arith.maximumf %15, %16 : vector<32x128xf32>
    %c0_12 = arith.constant 0 : index
    %c0_13 = arith.constant 0 : index
    %18 = vector.load %arg6[%c0_12, %c0_13] : memref<32x1xf32, #tpu.memory_space<vmem>>, vector<32x1xf32>
    %19 = vector.broadcast %18 : vector<32x1xf32> to vector<32x128xf32>
    %20 = arith.mulf %17, %19 : vector<32x128xf32>
    %cst_14 = arith.constant dense<0.000000e+00> : vector<128xf32>
    %21 = vector.multi_reduction <add>, %20, %cst_14 [0] : vector<32x128xf32> to vector<128xf32>
    %22 = vector.shape_cast %21 : vector<128xf32> to vector<1x128xf32>
    %c0_15 = arith.constant 0 : index
    %c0_16 = arith.constant 0 : index
    %23 = memref.load %arg7[%c0_15, %c0_16] : memref<1x1xf32, #tpu.memory_space<smem>>
    %24 = vector.broadcast %23 : f32 to vector<1x128xf32>
    %25 = arith.addf %22, %24 : vector<1x128xf32>
    %c0_17 = arith.constant 0 : index
    %c0_18 = arith.constant 0 : index
    %26 = vector.load %arg8[%c0_17, %c0_18] : memref<1x128xf32, #tpu.memory_space<vmem>>, vector<1x128xf32>
    tpu.vector_store %arg8[%c0_17, %c0_18], %25 {strides = array<i32>} : memref<1x128xf32, #tpu.memory_space<vmem>>, vector<1x128xf32>,
    return
  }
  func.func @transform_0(%arg0: i32) -> (i32, i32) {
    %c0_i32 = arith.constant 0 : i32
    %c0_i32_0 = arith.constant 0 : i32
    return %arg0, %c0_i32 : i32, i32
  }
  func.func @transform_1(%arg0: i32) -> (i32, i32) {
    %c0_i32 = arith.constant 0 : i32
    %c0_i32_0 = arith.constant 0 : i32
    %c0_i32_1 = arith.constant 0 : i32
    return %c0_i32, %c0_i32_0 : i32, i32
  }
  func.func @transform_2(%arg0: i32) -> (i32, i32) {
    %c0_i32 = arith.constant 0 : i32
    %c0_i32_0 = arith.constant 0 : i32
    %c0_i32_1 = arith.constant 0 : i32
    return %c0_i32, %c0_i32_0 : i32, i32
  }
  func.func @transform_3(%arg0: i32) -> (i32, i32) {
    %c0_i32 = arith.constant 0 : i32
    %c0_i32_0 = arith.constant 0 : i32
    %c0_i32_1 = arith.constant 0 : i32
    return %c0_i32, %c0_i32_0 : i32, i32
  }
  func.func @transform_4(%arg0: i32) -> (i32, i32) {
    %c0_i32 = arith.constant 0 : i32
    %c0_i32_0 = arith.constant 0 : i32
    %c0_i32_1 = arith.constant 0 : i32
    return %c0_i32, %c0_i32_0 : i32, i32
  }
  func.func @transform_5(%arg0: i32) -> (i32, i32) {
    %c0_i32 = arith.constant 0 : i32
    %c0_i32_0 = arith.constant 0 : i32
    %c0_i32_1 = arith.constant 0 : i32
    return %c0_i32, %c0_i32_0 : i32, i32
  }
  func.func @transform_6(%arg0: i32) -> (i32, i32) {
    %c0_i32 = arith.constant 0 : i32
    %c0_i32_0 = arith.constant 0 : i32
    %c0_i32_1 = arith.constant 0 : i32
    return %c0_i32, %c0_i32_0 : i32, i32
  }
  func.func @transform_7(%arg0: i32) -> (i32, i32) {
    %c0_i32 = arith.constant 0 : i32
    %c0_i32_0 = arith.constant 0 : i32
    return %c0_i32, %arg0 : i32, i32
  }
}

</mosaic_0001>

<bundles_post_ra>
// kernel: tpu_custom_call.1
= control target key start
LH: loop header
LB: loop body
LE: loop exit
PB: predicated region body
PF: predicated region fallthrough
CT: control target
= control target key end

     0   :  { %s646_s0 = inlined_call_operand.vmem [shape: f32[8,32], index: 0, kind: input, shape index: {}]   ;;  %s647_s1 = inlined_call_operand.vmem [shape: bf16[64,32], index: 1, kind: input, shape index: {}]   ;;  %s648_s2 = inlined_call_operand.vmem [shape: f32[64,1], index: 2, kind: input, shape index: {}]   ;;  %s649_s3 = inlined_call_operand.vmem [shape: bf16[32,64], index: 3, kind: input, shape index: {}]   ;;  %s650_s4 = inlined_call_operand.vmem [shape: f32[32,1], index: 4, kind: input, shape index: {}]   ;;  %s651_s5 = inlined_call_operand.vmem [shape: f32[32,1], index: 5, kind: input, shape index: {}]   ;;  %s652_s6 = inlined_call_operand.<no memory space> [shape: f32[1,1], index: 6, kind: input, shape index: {}]   ;;  %s653_s7 = inlined_call_operand.hbm [shape: f32[1,128], index: 7, kind: output, shape index: {}]  }
   0x1   :  { %v29_v0 = vld [vmem:[%s646_s0] sm:$0xff]  ;;  %v30_v1 = vld [vmem:[%s646_s0 + $0x8] sm:$0xff]  ;;  %v31_v2 = vld [vmem:[%s646_s0 + $0x10] sm:$0xff] }
   0x2   :  { %45 = vxpose.xlu0.b32.start [1/16] (narrow) %v29_v0, 32 }
   0x6   :  { %46 = vxpose.xlu0.b32.cont [2/16] (narrow) %v30_v1, 32 }
   0xa   :  { %47 = vxpose.xlu0.b32.cont [3/16] (narrow) %v31_v2, 32 }
   0xb   :  { %13 = vsyncpa [#allocation4], 0  ;;  %v32_v3 = vld [vmem:[%s646_s0 + $0x18] sm:$0xff]  ;;  %v33_v4 = vld [vmem:[%s646_s0 + $0x20] sm:$0xff]  ;;  %vm155_vm0 = vcmask 261120   ;;  %v478_v8 = vmov 0  }
   0xc   :  { %v450_v5 = vld [vmem:[%s647_s1] sm:$0xff]   ;;  %v34_v6 = vld [vmem:[%s646_s0 + $0x28] sm:$0xff]  ;;  %v93_v7 = vld [vmem:[%s648_s2 + $0x30] sm:$0xff]  ;;  %448 = vset.pattern.permute.xlu1 %v478_v8  ;;  %vm283_vm1 = vcmask 523264   ;;  %s479_s27 = smov [#allocation3]  }
   0xd   :  { %426 = vmatprep.mubr.msk.bf16.mxu0 %vm155_vm0, %v450_v5  ;;  %v35_v9 = vld [vmem:[%s646_s0 + $0x30] sm:$0xff]  ;;  %127 = vperm.xlu1 %448, %v93_v7   ;;  %v36_v10 = vld [vmem:[%s646_s0 + $0x38] sm:$0xff]  ;;  %v37_v12 = vld [vmem:[%s646_s0 + $0x40] sm:$0xff]  ;;  %s390_s28 = sshll.u32 %s479_s27, 4  ;;  %s391_s28 = int_to_ptr.vmem [resolvable:$true] %s390_s28 }
   0xe   :  { %48 = vxpose.xlu0.b32.cont [4/16] (narrow) %v32_v3, 32  ;;  %v94_v11 = vld [vmem:[%s648_s2 + $0x38] sm:$0xff]  ;;  %v91_v13 = vld [vmem:[%s648_s2 + $0x20] sm:$0xff]  ;;  %v38_v14 = vld [vmem:[%s646_s0 + $0x48] sm:$0xff]  ;;  %s456_s29 = scalar_lea.vmem %s391_s28, 16  ;;  %s460_s30 = scalar_lea.vmem %s391_s28, 32 }
   0xf   :  { %v92_v15 = vld [vmem:[%s648_s2 + $0x28] sm:$0xff]  ;;  %v39_v16 = vld [vmem:[%s646_s0 + $0x50] sm:$0xff]  ;;  %v40_v18 = vld [vmem:[%s646_s0 + $0x58] sm:$0xff]  ;;  %p457_p0 = scmp.ne.s32.totalorder %s391_s28, %s456_s29  ;;  %p461_p1 = scmp.lt.s32.totalorder %s391_s28, %s391_s28 }
  0x10   :  { %v89_v17 = vld [vmem:[%s648_s2 + $0x10] sm:$0xff]  ;;  %v90_v19 = vld [vmem:[%s648_s2 + $0x18] sm:$0xff]  ;;  %v41_v20 = vld [vmem:[%s646_s0 + $0x60] sm:$0xff]  ;;  %p462_p2 = scmp.lt.s32.totalorder %s460_s30, %s456_s29 }
  0x11   :  { %132 = vperm.xlu1 %448, %v94_v11   ;;  %v87_v21 = vld [vmem:[%s648_s2] sm:$0xff]  ;;  %v42_v22 = vld [vmem:[%s646_s0 + $0x68] sm:$0xff]  ;;  %v43_v24 = vld [vmem:[%s646_s0 + $0x70] sm:$0xff] }
  0x12   :  { %49 = vxpose.xlu0.b32.cont [5/16] (narrow) %v33_v4, 32  ;;  %v88_v23 = vld [vmem:[%s648_s2 + $0x8] sm:$0xff]  ;;  %v249_v25 = vld [vmem:[%s650_s4] sm:$0xff]  ;;  %v44_v26 = vld [vmem:[%s646_s0 + $0x78] sm:$0xff]  ;;  %p463_p3 = por %p462_p2, %p461_p1 }
  0x13   :  { %v250_v27 = vld [vmem:[%s650_s4 + $0x8] sm:$0xff]  ;;  %v251_v28 = vld [vmem:[%s650_s4 + $0x10] sm:$0xff]  ;;  %v252_v29 = vld [vmem:[%s650_s4 + $0x18] sm:$0xff] }
  0x14   :  { %v343_v30 = vld [vmem:[%s651_s5] sm:$0xff]  ;;  %v344_v31 = vld [vmem:[%s651_s5 + $0x8] sm:$0xff]  ;;  %v345_v32 = vld [vmem:[%s651_s5 + $0x10] sm:$0xff]  ;;  %p464_p4 = pnand %p463_p3, %p457_p0 }
  0x15   :  { %117 = vperm.xlu1 %448, %v91_v13   ;;  %v346_v33 = vld [vmem:[%s651_s5 + $0x18] sm:$0xff]  ;;  %v451_v40 = vld [vmem:[%s647_s1 + $0x8] sm:$0xff]   ;;  %v452_v41 = vld [vmem:[%s647_s1 + $0x10] sm:$0xff]  }
  0x16   :  { %50 = vxpose.xlu0.b32.cont [6/16] (narrow) %v34_v6, 32  ;;  %v453_v42 = vld [vmem:[%s647_s1 + $0x18] sm:$0xff]   ;;  %v454_v43 = vld [vmem:[%s649_s3] sm:$0xff]  }
  0x17   :  { %442 = vmatprep.mubr.msk.bf16.mxu1 %vm283_vm1, %v454_v43 }
  0x19   :  { %122 = vperm.xlu1 %448, %v92_v15  }
  0x1a   :  { %51 = vxpose.xlu0.b32.cont [7/16] (narrow) %v35_v9, 32 }
  0x1d   :  { %107 = vperm.xlu1 %448, %v89_v17  }
  0x1e   :  { %52 = vxpose.xlu0.b32.cont [8/16] (narrow) %v36_v10, 32 }
  0x21   :  { %112 = vperm.xlu1 %448, %v90_v19  }
  0x22   :  { %53 = vxpose.xlu0.b32.cont [9/16] (narrow) %v37_v12, 32 }
  0x25   :  { %97 = vperm.xlu1 %448, %v87_v21  }
  0x26   :  { %54 = vxpose.xlu0.b32.cont [10/16] (narrow) %v38_v14, 32 }
  0x29   :  { %102 = vperm.xlu1 %448, %v88_v23  }
  0x2a   :  { %55 = vxpose.xlu0.b32.cont [11/16] (narrow) %v39_v16, 32  ;;  %v455_v16 = vld [vmem:[%s649_s3 + $0x8] sm:$0xff]  }
  0x2d   :  { %255 = vperm.xlu1 %448, %v249_v25  }
  0x2e   :  { %56 = vxpose.xlu0.b32.cont [12/16] (narrow) %v40_v18, 32 }
  0x31   :  { %260 = vperm.xlu1 %448, %v250_v27  }
  0x32   :  { %57 = vxpose.xlu0.b32.cont [13/16] (narrow) %v41_v20, 32 }
  0x35   :  { %265 = vperm.xlu1 %448, %v251_v28  }
  0x36   :  { %58 = vxpose.xlu0.b32.cont [14/16] (narrow) %v42_v22, 32 }
  0x39   :  { %270 = vperm.xlu1 %448, %v252_v29  }
  0x3a   :  { %59 = vxpose.xlu0.b32.cont [15/16] (narrow) %v43_v24, 32 }
  0x3d   :  { %349 = vperm.xlu1 %448, %v343_v30  }
  0x3e   :  { %60 = vxpose.xlu0.b32.end [16/16] (narrow) %v44_v26, 32 }
  0x41   :  { %354 = vperm.xlu1 %448, %v344_v31  }
  0x45   :  { %359 = vperm.xlu1 %448, %v345_v32  }
  0x49   :  { %364 = vperm.xlu1 %448, %v346_v33  }
  0x67   :  { %449 = vset.pattern.permute.xlu0 %v478_v8 }
  0x7e   :  { %v61_v34 = vpop.trf.xlu0 }
  0x82   :  { %v62_v35 = vpop.trf.xlu0 }
  0x83   :  { %v77_v39 = vpack.c.bf16 %v62_v35, %v61_v34 }
  0x86   :  { %v63_v36 = vpop.trf.xlu0 }
  0x88   :  { %v128_v44 = vpop.permute.xlu1 %127 }
  0x8a   :  { %v64_v37 = vpop.trf.xlu0 }
  0x8b   :  { %v78_v38 = vpack.c.bf16 %v64_v37, %v63_v36 }
  0x8c   :  { %v133_v45 = vpop.permute.xlu1 %132 }
  0x8d   :  { %422 = vmatprep.subr.bf16.mxu0 %v78_v38 }
  0x8e   :  { %423 = vmatpush3.bf16.msra.mxu0 %v78_v38 }
  0x8f   :  { %424 = vmatprep.subr.bf16.mxu0 %v77_v39 }
  0x90   :  { %v118_v46 = vpop.permute.xlu1 %117 }
  0x92   :  { %425 = vmatpush3.bf16.msra.mxu0 %v77_v39 }
  0x94   :  { %v123_v47 = vpop.permute.xlu1 %122 }
  0x95   :  { %427 = vmatmul.mubr.msk.bf16.vlgmr.msra.gmra.mxu0 %vm155_vm0, %v451_v40 }
  0x96   :  { %430 = vmatprep.mubr.msk.bf16.mxu0 %vm155_vm0, %v452_v41 }
  0x98   :  { %v108_v48 = vpop.permute.xlu1 %107 }
  0x9c   :  { %v113_v52 = vpop.permute.xlu1 %112 }
  0x9d   :  { %431 = vmatmul.mubr.msk.bf16.gmra.mxu0 %vm155_vm0, %v453_v42 }
  0xa0   :  { %v98_v57 = vpop.permute.xlu1 %97 }
  0xa4   :  { %v103_v6 = vpop.permute.xlu1 %102 }
  0xa8   :  { %v256_v17 = vpop.permute.xlu1 %255 }
  0xac   :  { %v261_v18 = vpop.permute.xlu1 %260 }
  0xb0   :  { %v266_v19 = vpop.permute.xlu1 %265 }
  0xb4   :  { %v271_v20 = vpop.permute.xlu1 %270 }
  0xb8   :  { %v350_v21 = vpop.permute.xlu1 %349 }
  0xbc   :  { %v355_v23 = vpop.permute.xlu1 %354 }
  0xc0   :  { %v360_v32 = vpop.permute.xlu1 %359 }
  0xc4   :  { %v365_v40 = vpop.permute.xlu1 %364 }
 0x155   :  { %v428_v49 = vpop.f32.mrf.mxu0 }
 0x156   :  { %v211_v2 = vadd.f32 %v428_v49, %v108_v48  ;;  %v381_v49 = vstv %s652_s6 }
 0x157   :  { %v202_v50 = vpop.f32.mrf.mxu0 }
 0x158   :  { %v235_v10 = vmax.f32 %v211_v2, 0.0  ;;  %v203_v11 = vadd.f32 %v202_v50, %v98_v57 }
 0x159   :  { %v429_v51 = vpop.f32.mrf.mxu0 }
 0x15a   :  { %v214_v62 = vadd.f32 %v429_v51, %v113_v52  ;;  %v233_v14 = vmax.f32 %v203_v11, 0.0 }
 0x15b   :  { %v205_v53 = vpop.f32.mrf.mxu0 }
 0x15c   :  { %v236_v7 = vmax.f32 %v214_v62, 0.0  ;;  %v206_v8 = vadd.f32 %v205_v53, %v103_v6 }
 0x15d   :  { %v432_v54 = vpop.f32.mrf.mxu0 }
 0x15e   :  { %v227_v56 = vadd.f32 %v432_v54, %v128_v44  ;;  %v246_v12 = vpack.c.bf16 %v236_v7, %v235_v10  ;;  %v234_v13 = vmax.f32 %v206_v8, 0.0 }
 0x15f   :  { %v218_v55 = vpop.f32.mrf.mxu0 }
 0x160   :  { %v219_v59 = vadd.f32 %v218_v55, %v118_v46  ;;  %v239_v63 = vmax.f32 %v227_v56, 0.0  ;;  %v245_v15 = vpack.c.bf16 %v234_v13, %v233_v14 }
 0x161   :  { %v433_v58 = vpop.f32.mrf.mxu0 }
 0x162   :  { %v230_v60 = vadd.f32 %v433_v58, %v133_v45  ;;  %v237_v3 = vmax.f32 %v219_v59, 0.0 }
 0x163   :  { %v221_v61 = vpop.f32.mrf.mxu0 }
 0x164   :  { %v240_v0 = vmax.f32 %v230_v60, 0.0  ;;  %v222_v1 = vadd.f32 %v221_v61, %v123_v47 }
 0x166   :  { %v238_v4 = vmax.f32 %v222_v1, 0.0  ;;  %v248_v5 = vpack.c.bf16 %v240_v0, %v239_v63 }
 0x168   :  { %v247_v9 = vpack.c.bf16 %v238_v4, %v237_v3  ;;  %434 = vmatprep.subr.bf16.mxu1 %v248_v5 }
 0x169   :  { %435 = vmatpush3.bf16.msra.mxu1 %v248_v5 }
 0x16a   :  { %436 = vmatprep.subr.bf16.mxu1 %v247_v9 }
 0x16d   :  { %437 = vmatpush3.bf16.msra.mxu1 %v247_v9 }
 0x16e   :  { %438 = vmatprep.subr.bf16.mxu1 %v246_v12 }
 0x171   :  { %439 = vmatpush3.bf16.msra.mxu1 %v246_v12 }
 0x172   :  { %440 = vmatprep.subr.bf16.mxu1 %v245_v15 }
 0x175   :  { %441 = vmatpush3.bf16.msra.mxu1 %v245_v15 }
 0x178   :  { %443 = vmatmul.mubr.msk.bf16.vlgmr.msra.gmra.mxu1 %vm283_vm1, %v455_v16 }
 0x238   :  { %v444_v22 = vpop.f32.mrf.mxu1 }
 0x239   :  { %v333_v27 = vadd.f32 %v444_v22, %v266_v19 }
 0x23a   :  { %v324_v24 = vpop.f32.mrf.mxu1 }
 0x23b   :  { %v325_v25 = vadd.f32 %v324_v24, %v256_v17  ;;  %v341_v33 = vmax.f32 %v333_v27, 0.0 }
 0x23c   :  { %v445_v26 = vpop.f32.mrf.mxu1 }
 0x23d   :  { %v339_v29 = vmax.f32 %v325_v25, 0.0  ;;  %v336_v30 = vadd.f32 %v445_v26, %v271_v20  ;;  %v369_v38 = vmul.f32 %v360_v32, %v341_v33 }
 0x23e   :  { %v327_v28 = vpop.f32.mrf.mxu1 }
 0x23f   :  { %v328_v31 = vadd.f32 %v327_v28, %v261_v18  ;;  %v367_v35 = vmul.f32 %v350_v21, %v339_v29  ;;  %v342_v36 = vmax.f32 %v336_v30, 0.0 }
 0x241   :  { %v340_v34 = vmax.f32 %v328_v31, 0.0  ;;  %v370_v41 = vmul.f32 %v365_v40, %v342_v36 }
 0x243   :  { %v368_v37 = vmul.f32 %v355_v23, %v340_v34 }
 0x245   :  { %v371_v39 = vadd.f32 %v368_v37, %v367_v35 }
 0x247   :  { %v372_v42 = vadd.f32 %v371_v39, %v369_v38 }
 0x249   :  { %v373_v43 = vadd.f32 %v372_v42, %v370_v41 }
 0x24b   :  { %v374_v44 = vrot.slane %v373_v43, 4 }
 0x24d   :  { %v375_v45 = vadd.f32 %v374_v44, %v373_v43 }
 0x24f   :  { %v376_v46 = vrot.slane %v375_v45, 2 }
 0x251   :  { %v377_v47 = vadd.f32 %v376_v46, %v375_v45 }
 0x253   :  { %v378_v48 = vrot.slane %v377_v47, 1 }
 0x255   :  { %v379_v50 = vadd.f32 %v378_v48, %v377_v47 }
 0x257   :  { %v382_v51 = vadd.f32 %v381_v49, %v379_v50 }
 0x259   :  { %383 = vst [vmem:[#allocation3] sm:$0x1] %v382_v51 }
 0x25a   :  { %467 = shalt.err (!%p464_p4)
}
 0x25b   :  { %393 = dma.vmem_to_hbm [thread:$0]  %s391_s28, 16, %s653_s7, [#allocation4]  }
 0x25c   :  { %476 = dma.done.wait [#allocation4], 16  }
 0x25d   :  { %477 = vsyncadd [#allocation4], 4294967280 }
 0x25e   :  { %397 = vsyncpa [#allocation4], 1 }

</bundles_post_ra>
